<compile_context>
chip_gen: v6e
topology: v6e:2x2x1
jax: 0.10.0
libtpu: 0.0.40
codegen_flags: <defaults>
</compile_context>

<pallas_src>
import functools
import math
import warnings

import numpy as np
import jax
import jax.numpy as jnp
from jax.experimental import pallas as pl
from jax.experimental.pallas import tpu as pltpu

warnings.filterwarnings("ignore", message="Some donated buffers were not usable")

_VMEM = pl.BlockSpec(memory_space=pltpu.MemorySpace.VMEM)
_SMEM = pl.BlockSpec(memory_space=pltpu.MemorySpace.SMEM)


# ----------------------------- kernels --------------------------------------

def _temporal_loss_kernel(scalars_ref, labels_ref, sup_ref, unsup_ref, hist_ref,
                          losses_ref, new_hist_ref, *, bs, bu, alpha):
    """Fused: supervised CE + softmax-MSE consistency loss + EMA history update.

    scalars_ref : SMEM f32[2]  = [ema_bias_correction_scale, ramp_up_weight w]
    labels_ref  : VMEM i32[bs, 1]
    sup_ref     : VMEM [bs, C]   supervised logits
    unsup_ref   : VMEM [bu, C]   unsupervised logits
    hist_ref    : VMEM f32[bs+bu, C]  stacked history [hist_sup; hist_unsup]
    losses_ref  : SMEM f32[3]  = [total, sup_loss, w*unsup_loss]
    new_hist_ref: VMEM f32[bs+bu, C]  (aliased with hist_ref's HBM buffer)
    """
    sup = sup_ref[...].astype(jnp.float32)        # (bs, C)
    unsup = unsup_ref[...].astype(jnp.float32)    # (bu, C)
    hist = hist_ref[...]                          # (bs+bu, C) f32
    labels = labels_ref[...]                      # (bs, 1) int32

    c = sup.shape[1]
    npred = bs + bu

    # -- one stacked softmax: a single row-max and row-sum shared by all four
    #    logit blocks (pred_sup, pred_unsup, hist_sup, hist_unsup). --
    pred = jnp.concatenate([sup, unsup], axis=0)              # (npred, C)
    stack = jnp.concatenate([pred, hist], axis=0)             # (2*npred, C)
    row_max = jnp.max(stack, axis=-1, keepdims=True)
    z = stack - row_max
    e = jnp.exp(z)
    row_sum = jnp.sum(e, axis=-1, keepdims=True)
    inv_sum = pl.reciprocal(row_sum, approx=True)             # EUP slot (free)
    sm = e * inv_sum                                          # softmax rows

    # -- supervised cross entropy (mean over batch); rows [0, bs) are pred_sup --
    logprob = z[:bs] - jnp.log(row_sum[:bs])                  # exact log for CE
    col = jax.lax.broadcasted_iota(jnp.int32, (bs, c), 1)
    onehot = col == labels
    sup_loss = -jnp.sum(jnp.where(onehot, logprob, 0.0)) * (1.0 / bs)

    # -- consistency loss: sum((softmax(pred) - softmax(hist))^2) / nelement
    #    for the sup and unsup pairs, as one subtract/square/sum. --
    diff = sm[:npred] - sm[npred:]
    row = jax.lax.broadcasted_iota(jnp.int32, (npred, c), 0)
    row_scale = jnp.where(row < bs, 1.0 / (bs * c), 1.0 / (bu * c))
    unsup_loss = jnp.sum(diff * diff * row_scale)

    # -- scalar epilogue fused in-kernel (was 2 extra host-side XLA dispatches) --
    scale = scalars_ref[0]
    w = scalars_ref[1]
    w_unsup = w * unsup_loss
    losses_ref[0] = sup_loss + w_unsup
    losses_ref[1] = sup_loss
    losses_ref[2] = w_unsup

    # -- temporal-ensembling history update (EMA + bias correction), in place --
    new_hist_ref[...] = (alpha * hist + (1.0 - alpha) * pred) * scale


def _ce_kernel(labels_ref, sup_ref, loss_ref):
    """Plain mean cross-entropy for the bti >= max_batch_num fallback branch."""
    sup = sup_ref[...].astype(jnp.float32)        # (bs, C)
    labels = labels_ref[...]                      # (bs, 1) int32
    bs, c = sup.shape
    row_max = jnp.max(sup, axis=-1, keepdims=True)
    z = sup - row_max
    row_sum = jnp.sum(jnp.exp(z), axis=-1, keepdims=True)
    logprob = z - jnp.log(row_sum)
    col = jax.lax.broadcasted_iota(jnp.int32, (bs, c), 1)
    onehot = col == labels
    loss_ref[0] = -jnp.sum(jnp.where(onehot, logprob, 0.0)) * (1.0 / bs)


# ----------------------------- call builders ---------------------------------

@functools.lru_cache(maxsize=None)
def _build_temporal_fwd(bs, bu, c, alpha):
    kernel = functools.partial(_temporal_loss_kernel, bs=bs, bu=bu, alpha=float(alpha))
    call = pl.pallas_call(
        kernel,
        out_shape=(
            jax.ShapeDtypeStruct((3,), jnp.float32),            # [total, sup, w*unsup]
            jax.ShapeDtypeStruct((bs + bu, c), jnp.float32),    # new stacked history
        ),
        in_specs=[_SMEM, _VMEM, _VMEM, _VMEM, _VMEM],
        out_specs=(_SMEM, _VMEM),
        input_output_aliases={4: 1},   # hist (input 4) is updated in place (output 1)
    )

    def fwd(scalars, labels_1d, y_pred_sup, y_pred_unsup, hist):
        labels = labels_1d.astype(jnp.int32).reshape(bs, 1)
        losses, new_hist = call(scalars, labels, y_pred_sup, y_pred_unsup, hist)
        # slice inside the jit -> no extra dispatches on the host side
        return losses[0], losses[1], losses[2], new_hist

    return jax.jit(fwd, donate_argnums=(4,))


@functools.lru_cache(maxsize=None)
def _build_ce_fwd(bs, c):
    call = pl.pallas_call(
        _ce_kernel,
        out_shape=jax.ShapeDtypeStruct((1,), jnp.float32),
        in_specs=[_VMEM, _VMEM],
        out_specs=_SMEM,
    )

    def fwd(labels_1d, y_pred_sup):
        labels = labels_1d.astype(jnp.int32).reshape(bs, 1)
        return call(labels, y_pred_sup)[0]

    return jax.jit(fwd)


# ----------------------------- module wrapper ---------------------------------

class TemporalEnsemblingLoss:
    """JAX/Pallas re-implementation of bert4torch TemporalEnsemblingLoss.forward.

    History is kept as ONE stacked (bs+bu, C) device array per batch index
    (rows [0, bs) = sup history, rows [bs, bs+bu) = unsup history).
    """

    def __init__(self, epochs, max_val=10.0, ramp_up_mult=-5.0, alpha=0.5,
                 max_batch_num=100, hist_device='cpu'):
        self.max_epochs = epochs
        self.max_val = float(max_val)
        self.ramp_up_mult = float(ramp_up_mult)
        self.alpha = float(alpha)
        self.max_batch_num = max_batch_num
        self.hist = []                 # stacked EMA history per batch index
        self.hist_device = hist_device  # kept for API parity; history stays on device
        self.hist_input_y = []
        assert (self.alpha >= 0) & (self.alpha < 1)

    def __call__(self, y_pred_sup, y_pred_unsup, y_true_sup, epoch, bti):
        if self.max_batch_num is None or bti < self.max_batch_num:
            bs, c = y_pred_sup.shape
            bu = y_pred_unsup.shape[0]
            self.init_hist(bti, bs, bu, c)
            sup_ratio = float(bs) / float(bs + bu)
            w = self.weight_schedule(epoch, sup_ratio)
            scale = 1.0 / (1.0 - self.alpha ** (epoch + 1))   # EMA bias correction
            scalars = jnp.asarray([scale, w], dtype=jnp.float32)
            fwd = _build_temporal_fwd(bs, bu, c, self.alpha)
            total, sup_loss, w_unsup_loss, new_hist = fwd(
                scalars, y_true_sup, y_pred_sup, y_pred_unsup, self.hist[bti])
            # blocking label readback only AFTER the kernel has been dispatched
            self.same_batch_check(y_true_sup, bti)
            self.hist[bti] = new_hist
            return (total, sup_loss, w_unsup_loss)
        else:
            bs, c = y_pred_sup.shape
            loss = _build_ce_fwd(bs, c)(y_true_sup, y_pred_sup)
            self.same_batch_check(y_true_sup, bti)
            return loss

    # -------- host-side bookkeeping (no Pallas equivalent: Python list state) --------
    # TODO(synk): history lists, same-batch assertion, and ramp-up schedule are
    # inherently host-side control/state; they stay in Python.
    def same_batch_check(self, y_true_sup, bti):
        if bti >= 10:
            return
        y_host = np.asarray(jax.device_get(y_true_sup))
        if bti >= len(self.hist_input_y):
            self.hist_input_y.append(y_host)
        else:
            err_msg = ('TemporalEnsemblingLoss requests the same sort dataloader, '
                       'you may need to set train_dataloader shuffle=False')
            assert np.array_equal(self.hist_input_y[bti], y_host), err_msg

    def weight_schedule(self, epoch, sup_ratio):
        max_val = self.max_val * sup_ratio
        if epoch == 0:
            return 0.0
        elif epoch >= self.max_epochs:
            return max_val
        return max_val * math.exp(
            self.ramp_up_mult * (1.0 - float(epoch) / self.max_epochs) ** 2)

    def init_hist(self, bti, bs, bu, c):
        if bti >= len(self.hist):
            self.hist.append(jnp.zeros((bs + bu, c), jnp.float32))


# ----------------------------- main ------------------------------------------

if __name__ == "__main__":
    key = jax.random.PRNGKey(0)
    k1, k2, k3 = jax.random.split(key, 3)

    btz, num_labels = 8, 32
    epochs = 10
    alpha, max_val, ramp_up_mult = 0.5, 10.0, -5.0

    y_pred_sup = jax.random.normal(k1, (btz, num_labels), jnp.float32)
    y_pred_unsup = jax.random.normal(k2, (btz, num_labels), jnp.float32)
    y_true_sup = jax.random.randint(k3, (btz,), 0, num_labels, jnp.int32)

    loss_fn = TemporalEnsemblingLoss(epochs=epochs, max_val=max_val,
                                     ramp_up_mult=ramp_up_mult, alpha=alpha)

    # ---------------- numpy (float64) reference ----------------
    sup_np = np.asarray(y_pred_sup, dtype=np.float64)
    unsup_np = np.asarray(y_pred_unsup, dtype=np.float64)
    lab_np = np.asarray(y_true_sup)

    def np_softmax(x):
        m = x.max(axis=-1, keepdims=True)
        e = np.exp(x - m)
        return e / e.sum(axis=-1, keepdims=True)

    def np_cross_entropy(logits, labels):
        m = logits.max(axis=-1, keepdims=True)
        z = logits - m
        lse = np.log(np.exp(z).sum(axis=-1, keepdims=True))
        lp = z - lse
        return float(-lp[np.arange(len(labels)), labels].mean())

    def np_mse(a, b):
        return float(((np_softmax(a) - np_softmax(b)) ** 2).sum() / a.size)

    hist_sup_ref = np.zeros_like(sup_np)
    hist_unsup_ref = np.zeros_like(unsup_np)

    for epoch in (0, 1, 3):
        total, sup_l, w_unsup_l = loss_fn(y_pred_sup, y_pred_unsup, y_true_sup,
                                          epoch=epoch, bti=0)
        jax.block_until_ready(total)

        # reference forward + state update
        sup_ratio = btz / (btz + btz)
        if epoch == 0:
            w = 0.0
        elif epoch >= epochs:
            w = max_val * sup_ratio
        else:
            w = max_val * sup_ratio * math.exp(ramp_up_mult * (1.0 - epoch / epochs) ** 2)
        ref_sup = np_cross_entropy(sup_np, lab_np)
        ref_unsup = np_mse(unsup_np, hist_unsup_ref) + np_mse(sup_np, hist_sup_ref)
        scale = 1.0 / (1.0 - alpha ** (epoch + 1))
        hist_unsup_ref = (alpha * hist_unsup_ref + (1.0 - alpha) * unsup_np) * scale
        hist_sup_ref = (alpha * hist_sup_ref + (1.0 - alpha) * sup_np) * scale

        # CE path is exact; consistency path uses the approx EUP reciprocal, so
        # its tolerance is relaxed to ~3e-3 relative.
        np.testing.assert_allclose(float(sup_l), ref_sup, rtol=1e-4, atol=1e-6)
        np.testing.assert_allclose(float(w_unsup_l), w * ref_unsup, rtol=3e-3, atol=1e-6)
        np.testing.assert_allclose(float(total), ref_sup + w * ref_unsup,
                                   rtol=3e-3, atol=1e-6)

    hist_dev = np.asarray(loss_fn.hist[0], dtype=np.float64)
    np.testing.assert_allclose(hist_dev[:btz], hist_sup_ref, rtol=1e-4, atol=1e-5)
    np.testing.assert_allclose(hist_dev[btz:], hist_unsup_ref, rtol=1e-4, atol=1e-5)

    # ---------------- supervised-only fallback branch (bti >= max_batch_num) ----------------
    loss_fn_sup_only = TemporalEnsemblingLoss(epochs=epochs, max_batch_num=0)
    sup_only = loss_fn_sup_only(y_pred_sup, y_pred_unsup, y_true_sup, epoch=0, bti=0)
    jax.block_until_ready(sup_only)
    np.testing.assert_allclose(float(sup_only), np_cross_entropy(sup_np, lab_np),
                               rtol=1e-4, atol=1e-6)

    print("KERNEL_OK")
</pallas_src>

<mosaic_0001>
module attributes {stable_mosaic.version = 11 : i64} {
  func.func @_temporal_loss_kernel(%arg0: memref<2xf32, #tpu.memory_space<smem>>, %arg1: memref<8x1xi32, #tpu.memory_space<vmem>>, %arg2: memref<8x32xf32, #tpu.memory_space<vmem>>, %arg3: memref<8x32xf32, #tpu.memory_space<vmem>>, %arg4: memref<16x32xf32, #tpu.memory_space<vmem>>, %arg5: memref<3xf32, #tpu.memory_space<smem>>, %arg6: memref<16x32xf32, #tpu.memory_space<vmem>>) attributes {dimension_semantics = [], scalar_prefetch = 0 : i64, scratch_operands = 0 : i64, tpu.core_type = #tpu.core_type<tc>} {
    %c0 = arith.constant 0 : index
    %c0_0 = arith.constant 0 : index
    %0 = vector.load %arg2[%c0, %c0_0] : memref<8x32xf32, #tpu.memory_space<vmem>>, vector<8x32xf32>
    %c0_1 = arith.constant 0 : index
    %c0_2 = arith.constant 0 : index
    %1 = vector.load %arg3[%c0_1, %c0_2] : memref<8x32xf32, #tpu.memory_space<vmem>>, vector<8x32xf32>
    %c0_3 = arith.constant 0 : index
    %c0_4 = arith.constant 0 : index
    %2 = vector.load %arg4[%c0_3, %c0_4] : memref<16x32xf32, #tpu.memory_space<vmem>>, vector<16x32xf32>
    %c0_5 = arith.constant 0 : index
    %c0_6 = arith.constant 0 : index
    %3 = vector.load %arg1[%c0_5, %c0_6] : memref<8x1xi32, #tpu.memory_space<vmem>>, vector<8x1xi32>
    %4 = tpu.concatenate %0, %1 in 0 : vector<8x32xf32>, vector<8x32xf32> -> vector<16x32xf32>
    %5 = tpu.concatenate %4, %2 in 0 : vector<16x32xf32>, vector<16x32xf32> -> vector<32x32xf32>
    %cst = arith.constant dense<0xFF800000> : vector<32xf32>
    %6 = vector.multi_reduction <maximumf>, %5, %cst [1] : vector<32x32xf32> to vector<32xf32>
    %7 = vector.shape_cast %6 : vector<32xf32> to vector<32x1xf32>
    %8 = vector.broadcast %7 : vector<32x1xf32> to vector<32x32xf32>
    %9 = arith.subf %5, %8 : vector<32x32xf32>
    %10 = math.exp %9 : vector<32x32xf32>
    %cst_7 = arith.constant dense<0.000000e+00> : vector<32xf32>
    %11 = vector.multi_reduction <add>, %10, %cst_7 [1] : vector<32x32xf32> to vector<32xf32>
    %12 = vector.shape_cast %11 : vector<32xf32> to vector<32x1xf32>
    %13 = tpu.reciprocal %12 {approx = true} : vector<32x1xf32> -> vector<32x1xf32>
    %14 = vector.broadcast %13 : vector<32x1xf32> to vector<32x32xf32>
    %15 = arith.mulf %10, %14 : vector<32x32xf32>
    %16 = vector.extract_strided_slice %9 {offsets = [0, 0], sizes = [8, 32], strides = [1, 1]} : vector<32x32xf32> to vector<8x32xf32>
    %17 = vector.extract_strided_slice %12 {offsets = [0, 0], sizes = [8, 1], strides = [1, 1]} : vector<32x1xf32> to vector<8x1xf32>
    %18 = math.log %17 : vector<8x1xf32>
    %19 = vector.broadcast %18 : vector<8x1xf32> to vector<8x32xf32>
    %20 = arith.subf %16, %19 : vector<8x32xf32>
    %21 = tpu.iota {dimensions = array<i32: 1>} : vector<8x32xi32>
    %22 = vector.broadcast %3 : vector<8x1xi32> to vector<8x32xi32>
    %23 = arith.cmpi eq, %21, %22 : vector<8x32xi32>
    %cst_8 = arith.constant 0.000000e+00 : f32
    %24 = vector.broadcast %cst_8 : f32 to vector<8x32xf32>
    %25 = arith.select %23, %20, %24 : vector<8x32xi1>, vector<8x32xf32>
    %26 = vector.shape_cast %25 : vector<8x32xf32> to vector<1x8x32xf32>
    %cst_9 = arith.constant dense<0.000000e+00> : vector<1xf32>
    %27 = vector.multi_reduction <add>, %26, %cst_9 [1, 2] : vector<1x8x32xf32> to vector<1xf32>
    %28 = vector.shape_cast %27 : vector<1xf32> to vector<1x1x1xf32>
    %29 = vector.extract %28[0, 0, 0] : f32 from vector<1x1x1xf32>
    %cst_10 = arith.constant 0.000000e+00 : f32
    %30 = arith.subf %cst_10, %29 : f32
    %cst_11 = arith.constant 1.250000e-01 : f32
    %31 = arith.mulf %30, %cst_11 : f32
    %32 = vector.extract_strided_slice %15 {offsets = [0, 0], sizes = [16, 32], strides = [1, 1]} : vector<32x32xf32> to vector<16x32xf32>
    %33 = vector.extract_strided_slice %15 {offsets = [16, 0], sizes = [16, 32], strides = [1, 1]} : vector<32x32xf32> to vector<16x32xf32>
    %34 = arith.subf %32, %33 : vector<16x32xf32>
    %35 = tpu.iota {dimensions = array<i32: 0>} : vector<16x32xi32>
    %c8_i32 = arith.constant 8 : i32
    %36 = vector.broadcast %c8_i32 : i32 to vector<16x32xi32>
    %37 = arith.cmpi slt, %35, %36 : vector<16x32xi32>
    %cst_12 = arith.constant 3.906250e-03 : f32
    %cst_13 = arith.constant 3.906250e-03 : f32
    %38 = vector.broadcast %cst_12 : f32 to vector<16x32xf32>
    %39 = vector.broadcast %cst_13 : f32 to vector<16x32xf32>
    %40 = arith.select %37, %38, %39 : vector<16x32xi1>, vector<16x32xf32>
    %41 = arith.mulf %34, %34 : vector<16x32xf32>
    %42 = arith.mulf %41, %40 : vector<16x32xf32>
    %43 = vector.shape_cast %42 : vector<16x32xf32> to vector<1x16x32xf32>
    %cst_14 = arith.constant dense<0.000000e+00> : vector<1xf32>
    %44 = vector.multi_reduction <add>, %43, %cst_14 [1, 2] : vector<1x16x32xf32> to vector<1xf32>
    %45 = vector.shape_cast %44 : vector<1xf32> to vector<1x1x1xf32>
    %46 = vector.extract %45[0, 0, 0] : f32 from vector<1x1x1xf32>
    %c0_15 = arith.constant 0 : index
    %47 = memref.load %arg0[%c0_15] : memref<2xf32, #tpu.memory_space<smem>>
    %c1 = arith.constant 1 : index
    %48 = memref.load %arg0[%c1] : memref<2xf32, #tpu.memory_space<smem>>
    %49 = arith.mulf %48, %46 : f32
    %50 = arith.addf %31, %49 : f32
    %c0_16 = arith.constant 0 : index
    %51 = memref.load %arg5[%c0_16] : memref<3xf32, #tpu.memory_space<smem>>
    memref.store %50, %arg5[%c0_16] : memref<3xf32, #tpu.memory_space<smem>>
    %c1_17 = arith.constant 1 : index
    %52 = memref.load %arg5[%c1_17] : memref<3xf32, #tpu.memory_space<smem>>
    memref.store %31, %arg5[%c1_17] : memref<3xf32, #tpu.memory_space<smem>>
    %c2 = arith.constant 2 : index
    %53 = memref.load %arg5[%c2] : memref<3xf32, #tpu.memory_space<smem>>
    memref.store %49, %arg5[%c2] : memref<3xf32, #tpu.memory_space<smem>>
    %cst_18 = arith.constant 5.000000e-01 : f32
    %54 = vector.broadcast %cst_18 : f32 to vector<16x32xf32>
    %55 = arith.mulf %54, %2 : vector<16x32xf32>
    %cst_19 = arith.constant 5.000000e-01 : f32
    %56 = vector.broadcast %cst_19 : f32 to vector<16x32xf32>
    %57 = arith.mulf %56, %4 : vector<16x32xf32>
    %58 = arith.addf %55, %57 : vector<16x32xf32>
    %59 = vector.broadcast %47 : f32 to vector<16x32xf32>
    %60 = arith.mulf %58, %59 : vector<16x32xf32>
    %c0_20 = arith.constant 0 : index
    %c0_21 = arith.constant 0 : index
    %61 = vector.load %arg6[%c0_20, %c0_21] : memref<16x32xf32, #tpu.memory_space<vmem>>, vector<16x32xf32>
    tpu.vector_store %arg6[%c0_20, %c0_21], %60 {strides = array<i32>} : memref<16x32xf32, #tpu.memory_space<vmem>>, vector<16x32xf32>,
    return
  }
}

</mosaic_0001>

<bundles_post_ra>
// kernel: fwd.1
= control target key start
LH: loop header
LB: loop body
LE: loop exit
PB: predicated region body
PF: predicated region fallthrough
CT: control target
= control target key end

     0   :  { %12 = vsyncpa [#allocation4], 0  ;;  %s374_s0 = inlined_call_operand.vmem [shape: f32[2], index: 0, kind: input, shape index: {}]   ;;  %s375_s1 = inlined_call_operand.vmem [shape: s32[8,1], index: 1, kind: input, shape index: {}]   ;;  %s376_s2 = inlined_call_operand.hbm [shape: f32[8,32], index: 2, kind: input, shape index: {}]   ;;  %s377_s3 = inlined_call_operand.hbm [shape: f32[8,32], index: 3, kind: input, shape index: {}]   ;;  %s378_s4 = inlined_call_operand.vmem [shape: f32[16,32], index: 4, kind: input, shape index: {}, may-alias: {4,6}]   ;;  %s379_s5 = inlined_call_operand.vmem [shape: f32[3], index: 5, kind: output, shape index: {0}]   ;;  %s380_s6 = inlined_call_operand.vmem [shape: f32[16,32], index: 6, kind: output, shape index: {1}, may-alias: {4,6}]  }
   0x1   :  { %13 = vsyncpa [#allocation3], 0 }
   0x2   :  { %14 = vsyncpa [#allocation8], 0 }
   0x3   :  { %15 = vsyncpa [#allocation5], 0  ;;  %s22_s23 = sshll.u32 %s374_s0, 4  ;;  %s23_s23 = int_to_ptr.vmem [resolvable:$true] %s22_s23 }
   0x4   :  { %s222_s24 = scalar_lea.vmem %s23_s23, 16  ;;  %p227_p1 = scmp.lt.s32.totalorder %s23_s23, %s23_s23 }
   0x5   :  { %p223_p0 = scmp.ne.s32.totalorder %s23_s23, %s222_s24  ;;  %p228_p2 = scmp.lt.s32.totalorder %s222_s24, %s222_s24 }
   0x7   :  { %p229_p3 = por %p228_p2, %p227_p1 }
   0x9   :  { %p230_p4 = pnand %p229_p3, %p223_p0 }
   0xb   :  { %233 = shalt.err (!%p230_p4)
}
   0xc   :  { %s294_s25 = smov [#allocation2]   ;;  %s295_s26 = smov [#allocation6]  }
   0xd   :  { %25 = dma.vmem_to_smem %s23_s23, 16, %s294_s25, [#allocation4]  }
   0xe   :  { %s34_s27 = sshll.u32 %s295_s26, 4  ;;  %s296_s28 = smov [#allocation7]   ;;  %s35_s27 = int_to_ptr.vmem [resolvable:$true] %s34_s27 }
   0xf   :  { %s44_s29 = sshll.u32 %s296_s28, 4  ;;  %s242_s30 = scalar_lea.vmem %s35_s27, 128  ;;  %s45_s29 = int_to_ptr.vmem [resolvable:$true] %s44_s29 }
  0x10   :  { %p243_p5 = scmp.ne.s32.totalorder %s35_s27, %s242_s30  ;;  %p247_p6 = scmp.lt.s32.totalorder %s35_s27, %s35_s27 }
  0x11   :  { %p248_p7 = scmp.lt.s32.totalorder %s242_s30, %s242_s30 }
  0x13   :  { %p249_p8 = por %p248_p7, %p247_p6 }
  0x15   :  { %p250_p9 = pnand %p249_p8, %p243_p5 }
  0x17   :  { %253 = shalt.err (!%p250_p9)
}
  0x18   :  { %37 = dma.hbm_to_vmem [thread:$0]  %s376_s2, 128, %s35_s27, [#allocation3]  }
  0x19   :  { %s262_s8 = scalar_lea.vmem %s45_s29, 128  ;;  %p267_p11 = scmp.lt.s32.totalorder %s45_s29, %s45_s29 }
  0x1a   :  { %p263_p10 = scmp.ne.s32.totalorder %s45_s29, %s262_s8  ;;  %p268_p12 = scmp.lt.s32.totalorder %s262_s8, %s262_s8 }
  0x1c   :  { %p269_p13 = por %p268_p12, %p267_p11 }
  0x1e   :  { %p270_p0 = pnand %p269_p13, %p263_p10 }
  0x20   :  { %273 = shalt.err (!%p270_p0)
}
  0x21   :  { %47 = dma.hbm_to_vmem [thread:$0]  %s377_s3, 128, %s45_s29, [#allocation8]  }
  0x22   :  { %286 = dma.done.wait [#allocation4], 16  }
  0x23   :  { %287 = vsyncadd [#allocation4], 4294967280 }
  0x24   :  { %288 = dma.done.wait [#allocation3], 128  }
  0x25   :  { %289 = vsyncadd [#allocation3], 4294967168 }
  0x26   :  { %290 = dma.done.wait [#allocation8], 128  }
  0x27   :  { %291 = vsyncadd [#allocation8], 4294967168 }
  0x28   :  { %59 = sfence }
  0x29   :  { %v60_v0 = vld [vmem:[#allocation6] sm:$0xff]  ;;  %vm65_vm0 = vcmask 261120   ;;  %s150_s12 = sld [smem:[#allocation2]]  ;;  %v61_v2 = vld [vmem:[#allocation7] sm:$0xff]  ;;  %v297_v17 = vmov 0   ;;  %v113_v43 = vlaneseq  ;;  %s177_s24 = sshll.u32 %s379_s5, 4  ;;  %s178_s24 = int_to_ptr.vmem [resolvable:$true] %s177_s24 }
  0x2a   :  { %v62_v1 = vld [vmem:[%s378_s4] sm:$0xff]  ;;  %v66_v3 = vsel %vm65_vm0, %v60_v0, -inf  ;;  %v162_v4 = vmul.f32 0.5, %v60_v0  ;;  %v63_v7 = vld [vmem:[%s378_s4 + $0x8] sm:$0xff]  ;;  %v163_v8 = vmul.f32 0.5, %v61_v2  ;;  %v69_v11 = vsel %vm65_vm0, %v61_v2, -inf  ;;  %203 = vset.pattern.permute.xlu0 %v297_v17  ;;  %p279_p2 = scmp.lt.s32.totalorder %s178_s24, %s178_s24 }
  0x2b   :  { %v72_v5 = vsel %vm65_vm0, %v62_v1, -inf  ;;  %v160_v6 = vmul.f32 0.5, %v62_v1  ;;  %67 = vmax.xlane.f32.xlu0 %v66_v3  ;;  %v161_v9 = vmul.f32 0.5, %v63_v7  ;;  %v75_v12 = vsel %vm65_vm0, %v63_v7, -inf  ;;  %v64_v38 = vld [vmem:[%s375_s1] sm:$0xff]  ;;  %s193_s20 = sld [smem:[#allocation2 + $0x1]] }
  0x2c   :  { %73 = vmax.xlane.f32.xlu1 %v72_v5  ;;  %v114_v44 = vand.u32 127, %v113_v43  ;;  %s274_s27 = scalar_lea.vmem %s178_s24, 16 }
  0x2d   :  { %v164_v10 = vadd.f32 %v162_v4, %v160_v6  ;;  %v165_v13 = vadd.f32 %v163_v8, %v161_v9  ;;  %p275_p1 = scmp.ne.s32.totalorder %s178_s24, %s274_s27  ;;  %p280_p3 = scmp.lt.s32.totalorder %s274_s27, %s274_s27 }
  0x2f   :  { %v166_v14 = vstv %s150_s12  ;;  %70 = vmax.xlane.f32.xlu0 %v69_v11  ;;  %p281_p4 = por %p280_p3, %p279_p2 }
  0x30   :  { %76 = vmax.xlane.f32.xlu1 %v75_v12  ;;  %v167_v15 = vmul.f32 %v166_v14, %v164_v10  ;;  %v168_v16 = vmul.f32 %v166_v14, %v165_v13 }
  0x31   :  { %p282_p5 = pnand %p281_p4, %p275_p1 }
  0x32   :  { %169 = vst.msk [vmem:[%s380_s6] sm:$0xff] %vm65_vm0, %v167_v15  ;;  %170 = vst.msk [vmem:[%s380_s6 + $0x8] sm:$0xff] %vm65_vm0, %v168_v16 }
  0xb4   :  { %v68_v18 = vpop.xlane.xlu0 %67 }
  0xb5   :  { %v74_v19 = vpop.xlane.xlu1 %73  ;;  %v78_v20 = vsub.f32 %v60_v0, %v68_v18 }
  0xb6   :  { %v80_v21 = vsub.f32 %v62_v1, %v74_v19 }
  0xb7   :  { %v82_v22 = vmul.f32 1.442695, %v78_v20 }
  0xb8   :  { %v86_v23 = vmul.f32 1.442695, %v80_v21  ;;  %v71_v24 = vpop.xlane.xlu0 %70 }
  0xb9   :  { %v77_v25 = vpop.xlane.xlu1 %76  ;;  %204 = vpow2.f32 %v82_v22  ;;  %v79_v26 = vsub.f32 %v61_v2, %v71_v24 }
  0xba   :  { %v81_v27 = vsub.f32 %v63_v7, %v77_v25  ;;  %206 = vpow2.f32 %v86_v23 }
  0xbb   :  { %v84_v28 = vmul.f32 1.442695, %v79_v26 }
  0xbc   :  { %v88_v29 = vmul.f32 1.442695, %v81_v27 }
  0xbd   :  { %208 = vpow2.f32 %v84_v28 }
  0xbe   :  { %210 = vpow2.f32 %v88_v29 }
  0xc6   :  { %v205_v30 = vpop.eup %204 }
  0xc7   :  { %v207_v31 = vpop.eup %206  ;;  %v90_v32 = vsel %vm65_vm0, %v205_v30, 0.0 }
  0xc8   :  { %91 = vadd.xlane.f32.xlu0 %v90_v32  ;;  %v96_v33 = vsel %vm65_vm0, %v207_v31, 0.0 }
  0xca   :  { %v209_v34 = vpop.eup %208 }
  0xcb   :  { %v211_v35 = vpop.eup %210  ;;  %v93_v36 = vsel %vm65_vm0, %v209_v34, 0.0 }
  0xcc   :  { %97 = vadd.xlane.f32.xlu0 %v96_v33  ;;  %94 = vadd.xlane.f32.xlu1 %v93_v36  ;;  %v99_v37 = vsel %vm65_vm0, %v211_v35, 0.0 }
  0xd0   :  { %100 = vadd.xlane.f32.xlu1 %v99_v37 }
  0xe2   :  { %116 = vperm.xlu0 %203, %v64_v38  }
 0x151   :  { %v92_v39 = vpop.xlane.xlu0 %91 }
 0x152   :  { %212 = vlog2.f32 %v92_v39 }
 0x153   :  { %214 = vrcp.f32 %v92_v39 }
 0x155   :  { %v95_v40 = vpop.xlane.xlu1 %94  ;;  %v98_v41 = vpop.xlane.xlu0 %97 }
 0x156   :  { %216 = vrcp.f32 %v98_v41 }
 0x157   :  { %218 = vrcp.f32 %v95_v40 }
 0x159   :  { %v101_v42 = vpop.xlane.xlu1 %100 }
 0x15a   :  { %220 = vrcp.f32 %v101_v42 }
 0x15d   :  { %v117_v45 = vpop.permute.xlu0 %116 }
 0x15e   :  { %vm118_vm1 = vcmp.eq.s32.totalorder %v114_v44, %v117_v45 }
 0x15f   :  { %v213_v46 = vpop.eup %212 }
 0x160   :  { %v111_v47 = vmul.f32 0.6931472, %v213_v46  ;;  %v215_v48 = vpop.eup %214 }
 0x161   :  { %v106_v53 = vmul.f32 %v215_v48, %v205_v30 }
 0x162   :  { %v112_v49 = vsub.f32 %v78_v20, %v111_v47 }
 0x163   :  { %v217_v50 = vpop.eup %216 }
 0x164   :  { %v219_v51 = vpop.eup %218  ;;  %v119_v52 = vsel %vm118_vm1, %v112_v49, 0.0  ;;  %v108_v54 = vmul.f32 %v217_v50, %v207_v31 }
 0x165   :  { %v120_v55 = vsel %vm65_vm0, %v119_v52, 0.0  ;;  %v107_v58 = vmul.f32 %v219_v51, %v209_v34 }
 0x166   :  { %121 = vadd.xlane.f32.xlu1 %v120_v55  ;;  %v132_v57 = vsub.f32 %v106_v53, %v108_v54 }
 0x167   :  { %v221_v56 = vpop.eup %220 }
 0x168   :  { %v109_v59 = vmul.f32 %v221_v56, %v211_v35  ;;  %v134_v60 = vmul.f32 %v132_v57, %v132_v57 }
 0x16a   :  { %v133_v61 = vsub.f32 %v107_v58, %v109_v59  ;;  %v136_v63 = vmul.f32 0.00390625, %v134_v60 }
 0x16c   :  { %v135_v62 = vmul.f32 %v133_v61, %v133_v61  ;;  %v138_v1 = vsel %vm65_vm0, %v136_v63, 0.0 }
 0x16e   :  { %v137_v0 = vmul.f32 0.00390625, %v135_v62 }
 0x170   :  { %v139_v2 = vsel %vm65_vm0, %v137_v0, 0.0 }
 0x171   :  { %v140_v3 = vadd.f32 %v139_v2, %v138_v1 }
 0x173   :  { %141 = vadd.xlane.f32.xlu1 %v140_v3 }
 0x1ef   :  { %v122_v4 = vpop.xlane.xlu1 %121 }
 0x1f0   :  { %v123_v5 = vrot.slane %v122_v4, 4 }
 0x1f2   :  { %v124_v6 = vadd.f32 %v123_v5, %v122_v4 }
 0x1f4   :  { %v125_v7 = vrot.slane %v124_v6, 2 }
 0x1f6   :  { %v126_v8 = vadd.f32 %v125_v7, %v124_v6 }
 0x1f8   :  { %v127_v9 = vrot.slane %v126_v8, 1 }
 0x1fa   :  { %v128_v10 = vadd.f32 %v127_v9, %v126_v8 }
 0x1fc   :  { %v142_v11 = vpop.xlane.xlu1 %141  ;;  %194 = vpush %v128_v10 }
 0x1fd   :  { %v143_v12 = vrot.slane %v142_v11, 4 }
 0x1ff   :  { %v144_v13 = vadd.f32 %v143_v12, %v142_v11 }
 0x201   :  { %v145_v14 = vrot.slane %v144_v13, 2 }
 0x203   :  { %v146_v15 = vadd.f32 %v145_v14, %v144_v13 }
 0x205   :  { %v147_v16 = vrot.slane %v146_v15, 1 }
 0x207   :  { %v148_v17 = vadd.f32 %v147_v16, %v146_v15 }
 0x209   :  { %196 = vpush %v148_v17 }
 0x22d   :  { %s195_s1 = spop %194 }
 0x22e   :  { %s130_s18 = ssub.f32 0.0, %s195_s1 }
 0x230   :  { %s131_s19 = smul.f32 0.125, %s130_s18 }
 0x232   :  { %157 = sst [smem:[#allocation9 + $0x1]] %s131_s19 }
 0x23a   :  { %s197_s21 = spop %196 }
 0x23b   :  { %s152_s25 = smul.f32 %s197_s21, %s193_s20 }
 0x23d   :  { %s153_s26 = sadd.f32 %s152_s25, %s131_s19 }
 0x23e   :  { %159 = sst [smem:[#allocation9 + $0x2]] %s152_s25 }
 0x23f   :  { %155 = sst [smem:[#allocation9]] %s153_s26 }
 0x240   :  { %285 = shalt.err (!%p282_p5)
}
 0x241   :  { %s298_s28 = smov [#allocation9]  }
 0x242   :  { %180 = dma.smem_to_vmem %s298_s28, 16, %s178_s24, [#allocation5]  }
 0x243   :  { %292 = dma.done.wait [#allocation5], 16  }
 0x244   :  { %293 = vsyncadd [#allocation5], 4294967280 }
 0x245   :  { %188 = sfence }
 0x246   :  { %189 = vsyncpa [#allocation3], 1 }
 0x247   :  { %190 = vsyncpa [#allocation8], 1 }
 0x248   :  { %191 = vsyncpa [#allocation4], 1 }
 0x249   :  { %192 = vsyncpa [#allocation5], 1 }

</bundles_post_ra>
